<compile_context>
chip_gen: v7x
topology: tpu7x:2x2x1
jax: 0.10.0
libtpu: 0.0.40
codegen_flags: <defaults>
</compile_context>

<pallas_src>
import functools

import numpy as np
import jax
import jax.numpy as jnp
from jax import lax
from jax.experimental import pallas as pl
from jax.experimental.pallas import tpu as pltpu

_BN_EPS = 1e-5
_HIGH = jax.lax.Precision.HIGHEST

# ---------------------------------------------------------------------------
# pltpu.roll rotation-convention probe (resolved once, cached).
# ---------------------------------------------------------------------------
_ROLL_MATCHES_JNP = None


def _roll_probe_kernel(x_ref, o_ref):
    o_ref[...] = pltpu.roll(x_ref[...], shift=1, axis=1)


def _roll_matches_jnp_convention():
    """True  => pltpu.roll(x, s, axis)[..., i] == x[..., (i - s) % n]  (jnp.roll)
       False => pltpu.roll(x, s, axis)[..., i] == x[..., (i + s) % n]"""
    global _ROLL_MATCHES_JNP
    if _ROLL_MATCHES_JNP is None:
        x = jnp.arange(8 * 256, dtype=jnp.float32).reshape(8, 256)
        y = pl.pallas_call(
            _roll_probe_kernel,
            out_shape=jax.ShapeDtypeStruct((8, 256), jnp.float32))(x)
        v = float(y[0, 1])
        if v == float(x[0, 0]):
            _ROLL_MATCHES_JNP = True
        elif v == float(x[0, 2]):
            _ROLL_MATCHES_JNP = False
        else:
            raise RuntimeError("unexpected pltpu.roll behaviour in probe")
    return _ROLL_MATCHES_JNP


def _shift_lanes(v, s, size):
    """result[..., p] = v[..., (p + s) % size]   (last axis = lane axis)."""
    s = s % size
    if s == 0:
        return v
    amt = (size - s) if _roll_matches_jnp_convention() else s
    return pltpu.roll(v, shift=amt, axis=v.ndim - 1)


# ---------------------------------------------------------------------------
# Constant gather / mask matrices (built host-side with numpy, live in VMEM).
# ---------------------------------------------------------------------------
def _pool_select_matrix(nb, h, w):
    """0/1 matrix S (nb*h*w, nb*(h//2)*(w//2)): pooled = m @ S gathers the
    top-left corner of every 2x2 window (exact gather through the MXU)."""
    ho, wo = h // 2, w // 2
    p_in, p_out = nb * h * w, nb * ho * wo
    po = np.arange(p_out)
    n = po // (ho * wo)
    rem = po % (ho * wo)
    yo, xo = rem // wo, rem % wo
    src = n * h * w + (2 * yo) * w + (2 * xo)
    sel = np.zeros((p_in, p_out), np.float32)
    sel[src, po] = 1.0
    return jnp.asarray(sel)


def _gap_matrix(nb, h, w):
    """(nb*h*w, nb) averaging matrix: features = h @ A is the per-image mean."""
    p = nb * h * w
    a = np.zeros((p, nb), np.float32)
    for n in range(nb):
        a[n * h * w:(n + 1) * h * w, n] = 1.0 / (h * w)
    return jnp.asarray(a)


def _conv_tap_masks(nb, h, w):
    """(9, 1, nb*h*w) 0/1 masks: tap t=(dy,dx) is valid where the shifted source
    pixel stays inside the same image (implements the SAME zero padding)."""
    p = nb * h * w
    pp = np.arange(p)
    x = pp % w
    y = (pp // w) % h
    masks = np.zeros((9, 1, p), np.float32)
    t = 0
    for dy in (-1, 0, 1):
        for dx in (-1, 0, 1):
            ok = ((y + dy >= 0) & (y + dy < h) & (x + dx >= 0) & (x + dx < w))
            masks[t, 0, :] = ok.astype(np.float32)
            t += 1
    return jnp.asarray(masks)


# ---------------------------------------------------------------------------
# Fused kernel
# ---------------------------------------------------------------------------
def _make_fused_kernel(plan):
    """plan is a static list of steps referencing operand indices:
         ("pool", P_in, Wc, sel_idx)                         2x2 max pool
         ("conv", Wc, P, w_idx, mask_idx, s_idx, b_idx, ds)  BasicBlockRes
             ds is None (identity shortcut) or (wsc_idx, ssc_idx, bsc_idx)
         ("gap", avg_idx)                                    global average pool
    """
    def kernel(*refs):
        x_ref, o_ref = refs[0], refs[-1]
        params = refs[1:-1]
        h = x_ref[0]                                          # (Cin, P), lane-dense
        for step in plan:
            kind = step[0]
            if kind == "pool":
                _, p_in, wc, sel_i = step
                m = jnp.maximum(h, _shift_lanes(h, 1, p_in))     # x-pair max
                m = jnp.maximum(m, _shift_lanes(m, wc, p_in))    # y-pair max
                # exact 0/1 gather of the 2x2 window corners -> pooled layout
                h = jnp.dot(m, params[sel_i][...],
                            preferred_element_type=jnp.float32,
                            precision=_HIGH)
            elif kind == "conv":
                _, wc, p, w_i, m_i, s_i, b_i, ds = step
                w_ref, m_ref = params[w_i], params[m_i]
                acc = None
                t = 0
                for dy in (-1, 0, 1):
                    for dx in (-1, 0, 1):
                        if dy == 0 and dx == 0:
                            tap = h
                        else:
                            tap = _shift_lanes(h, dy * wc + dx, p) * m_ref[t]
                        part = jnp.dot(w_ref[t], tap,
                                       preferred_element_type=jnp.float32)
                        acc = part if acc is None else acc + part
                        t += 1
                acc = acc * params[s_i][...] + params[b_i][...]  # fused BN
                if ds is not None:                               # DownsampleB
                    wsc_i, ssc_i, bsc_i = ds
                    sc = (jnp.dot(params[wsc_i][...], h,
                                  preferred_element_type=jnp.float32)
                          * params[ssc_i][...] + params[bsc_i][...])
                else:                                            # identity
                    sc = h
                h = jnp.maximum(acc + sc, 0.0)                   # ReLU
            else:                                                # "gap"
                _, avg_i = step
                h = jnp.dot(h, params[avg_i][...],
                            preferred_element_type=jnp.float32,
                            precision=_HIGH)
        o_ref[0] = h.astype(o_ref.dtype)
    return kernel


def _zeros_index(ndim, g):
    return (0,) * ndim


# ---------------------------------------------------------------------------
# Forward pass (single fused pallas_call)
# ---------------------------------------------------------------------------
def specialized_net_forward(x_nchw, layers, pool_code):
    """x_nchw: (N, C, H, W) like PyTorch.  Returns (N, out_dim) features."""
    _roll_matches_jnp_convention()     # resolve roll convention before tracing
    N, Cin, H, W = x_nchw.shape
    out_dim = layers[-1]["w1"].shape[-1]

    # Split the batch over the grid only if every lane extent stays a multiple
    # of 128; with G=2 both v7x TensorCores get a chunk ("parallel" axis).
    def _chunk_ok(g):
        if g < 1 or N % g:
            return False
        nb = N // g
        hc, wc = H, W
        if (nb * hc * wc) % 128:
            return False
        p_code = list(pool_code)
        for i in range(len(layers)):
            while i in p_code:
                p_code.remove(i)
                hc //= 2
                wc //= 2
                if (nb * hc * wc) % 128:
                    return False
        return True

    G = 2 if (N >= 2 and _chunk_ok(2)) else 1
    NB = N // G

    # Input: NCHW -> (G, Cin, NB*H*W) with flat pixel index p = (nb*H + y)*W + x.
    xt = jnp.transpose(x_nchw, (1, 0, 2, 3)).reshape(Cin, G, NB, H, W)
    xt = jnp.transpose(xt, (1, 0, 2, 3, 4)).reshape(G, Cin, NB * H * W)

    # Static execution plan + de-duplicated VMEM-resident operands.
    operands, cache = [], {}

    def _add(arr):
        operands.append(arr)
        return len(operands) - 1

    def _add_cached(key, builder):
        if key not in cache:
            cache[key] = _add(builder())
        return cache[key]

    plan = []
    hc, wc = H, W
    p_code = list(pool_code)
    for i, L in enumerate(layers):
        while i in p_code:
            p_code.remove(i)
            sel_i = _add_cached(("pool", NB, hc, wc),
                                lambda n=NB, h_=hc, w_=wc:
                                _pool_select_matrix(n, h_, w_))
            plan.append(("pool", NB * hc * wc, wc, sel_i))
            hc //= 2
            wc //= 2
        w1 = L["w1"]                                  # (3, 3, Cin_l, Cout) HWIO
        cin_l, cout = w1.shape[2], w1.shape[3]
        p = NB * hc * wc
        w_i = _add(jnp.transpose(w1, (0, 1, 3, 2)).reshape(9, cout, cin_l))
        m_i = _add_cached(("mask", NB, hc, wc),
                          lambda n=NB, h_=hc, w_=wc: _conv_tap_masks(n, h_, w_))
        s_i = _add(L["scale1"].reshape(cout, 1))
        b_i = _add(L["bias1"].reshape(cout, 1))
        if L["downsample"]:
            ds = (_add(jnp.transpose(L["wsc"])),      # (Cout, Cin_l)
                  _add(L["scale_sc"].reshape(cout, 1)),
                  _add(L["bias_sc"].reshape(cout, 1)))
        else:
            ds = None
        plan.append(("conv", wc, p, w_i, m_i, s_i, b_i, ds))
    plan.append(("gap", _add(_gap_matrix(NB, hc, wc))))

    in_specs = [pl.BlockSpec((1, Cin, NB * H * W), lambda g: (g, 0, 0))]
    in_specs += [pl.BlockSpec(op.shape, functools.partial(_zeros_index, op.ndim))
                 for op in operands]

    out = pl.pallas_call(
        _make_fused_kernel(plan),
        out_shape=jax.ShapeDtypeStruct((G, out_dim, NB), jnp.float32),
        grid=(G,),
        in_specs=in_specs,
        out_specs=pl.BlockSpec((1, out_dim, NB), lambda g: (g, 0, 0)),
        compiler_params=pltpu.CompilerParams(
            dimension_semantics=("parallel",)),
    )(xt, *operands)
    return jnp.transpose(out, (0, 2, 1)).reshape(N, out_dim)


# ---------------------------------------------------------------------------
# Parameter construction (deterministic, mirrors SpecializedNet.__init__)
# ---------------------------------------------------------------------------
def _fused_bn(key, c):
    kg, kb, km, kv = jax.random.split(key, 4)
    gamma = 1.0 + 0.1 * jax.random.normal(kg, (c,), jnp.float32)
    beta = 0.1 * jax.random.normal(kb, (c,), jnp.float32)
    mean = 0.1 * jax.random.normal(km, (c,), jnp.float32)
    var = jnp.abs(jax.random.normal(kv, (c,), jnp.float32)) + 0.5
    scale = gamma / jnp.sqrt(var + _BN_EPS)
    bias = beta - mean * scale
    return scale, bias


def build_specialized_net(key, depth, width, pool, double, border):
    pool_code = [p - border for p in pool]
    double_code = [d - border for d in double]
    layers = []
    w = width
    for _ in range(depth - border):
        i = len(layers)
        last_width = w
        while i in double_code:
            double_code.remove(i)
            w *= 2
        key, k1, k2, k3, k4 = jax.random.split(key, 5)
        w1 = 0.1 * jax.random.normal(k1, (3, 3, last_width, w), jnp.float32)
        scale1, bias1 = _fused_bn(k2, w)
        downsample = last_width != w
        if downsample:                 # DownsampleB: 1x1 conv + BN
            wsc = 0.1 * jax.random.normal(k3, (last_width, w), jnp.float32)
            scale_sc, bias_sc = _fused_bn(k4, w)
        else:                          # identity shortcut (eye / 1 / 0)
            wsc = jnp.eye(last_width, dtype=jnp.float32)
            scale_sc = jnp.ones((w,), jnp.float32)
            bias_sc = jnp.zeros((w,), jnp.float32)
        layers.append(dict(w1=w1, scale1=scale1, bias1=bias1,
                           wsc=wsc, scale_sc=scale_sc, bias_sc=bias_sc,
                           downsample=downsample))
    return layers, pool_code, w   # w == out_dim


# ---------------------------------------------------------------------------
# Pure-JAX reference (no Pallas) used for correctness checking
# ---------------------------------------------------------------------------
def reference_forward(x_nchw, layers, pool_code):
    h = jnp.transpose(x_nchw, (0, 2, 3, 1))
    p_code = list(pool_code)
    for i, L in enumerate(layers):
        while i in p_code:
            p_code.remove(i)
            h = lax.reduce_window(h, -jnp.inf, lax.max,
                                  (1, 2, 2, 1), (1, 2, 2, 1), "VALID")
        conv = lax.conv_general_dilated(
            h, L["w1"], (1, 1), "SAME",
            dimension_numbers=("NHWC", "HWIO", "NHWC"))
        main = conv * L["scale1"] + L["bias1"]
        sc = jnp.einsum("nhwc,cd->nhwd", h, L["wsc"]) * L["scale_sc"] \
            + L["bias_sc"]
        h = jnp.maximum(main + sc, 0.0)
    return jnp.mean(h, axis=(1, 2))


# ---------------------------------------------------------------------------
if __name__ == "__main__":
    # Module config (args={'dataset': 'cifar'}; first_conv is unused in forward):
    depth, width, border = 3, 4, 0
    pool, double = [1], [2]   # max-pool before layer 1; double width at layer 2

    key = jax.random.PRNGKey(0)
    key, kx = jax.random.split(key)
    layers, pool_code, out_dim = build_specialized_net(
        key, depth, width, pool, double, border)

    # Input is NCHW like PyTorch; channels equal `width` (first layer in_planes).
    x = jax.random.normal(kx, (2, width, 16, 16), jnp.float32)

    feats = specialized_net_forward(x, layers, pool_code)
    feats = jax.block_until_ready(feats)

    ref = jax.block_until_ready(reference_forward(x, layers, pool_code))
    assert feats.shape == (2, out_dim), feats.shape
    # Tolerance leaves headroom for the TPU default matmul precision of the
    # in-kernel conv matmuls vs. the XLA reference convolution.
    assert jnp.allclose(feats, ref, atol=5e-3, rtol=5e-3), (
        f"mismatch: max abs err {jnp.max(jnp.abs(feats - ref))}")

    print("KERNEL_OK")
</pallas_src>

<mosaic_0001>
module attributes {stable_mosaic.version = 11 : i64} {
  func.func @_roll_probe_kernel(%arg0: memref<8x256xf32, #tpu.memory_space<vmem>>, %arg1: memref<8x256xf32, #tpu.memory_space<vmem>>) attributes {dimension_semantics = [], scalar_prefetch = 0 : i64, scratch_operands = 0 : i64, tpu.core_type = #tpu.core_type<tc>} {
    %c0 = arith.constant 0 : index
    %c0_0 = arith.constant 0 : index
    %0 = vector.load %arg0[%c0, %c0_0] : memref<8x256xf32, #tpu.memory_space<vmem>>, vector<8x256xf32>
    %c1_i32 = arith.constant 1 : i32
    %1 = tpu.dynamic_rotate %0 by %c1_i32 dim 1 : vector<8x256xf32>, i32 -> vector<8x256xf32>
    %c0_1 = arith.constant 0 : index
    %c0_2 = arith.constant 0 : index
    %2 = vector.load %arg1[%c0_1, %c0_2] : memref<8x256xf32, #tpu.memory_space<vmem>>, vector<8x256xf32>
    tpu.vector_store %arg1[%c0_1, %c0_2], %1 {strides = array<i32>} : memref<8x256xf32, #tpu.memory_space<vmem>>, vector<8x256xf32>,
    return
  }
}

</mosaic_0001>

<bundles_post_ra>
// kernel: tpu_custom_call.1
= control target key start
LH: loop header
LB: loop body
LE: loop exit
PB: predicated region body
PF: predicated region fallthrough
CT: control target
= control target key end

     0   :  { %6 = vsyncpa [#allocation3], 0  ;;  %s137_s0 = inlined_call_operand.hbm [shape: f32[8,256], index: 0, kind: input, shape index: {}]   ;;  %s138_s1 = inlined_call_operand.hbm [shape: f32[8,256], index: 1, kind: output, shape index: {}]  }
   0x1   :  { %7 = vsyncpa [#allocation4], 0  ;;  %s100_s6 = smov [#allocation2]   ;;  %s52_s10 = scalar_lea.hbm %s137_s0, 256 }
   0x2   :  { %s14_s7 = sshll.u32 %s100_s6, 4  ;;  %p53_p0 = scmp.ne.s32.totalorder %s137_s0, %s52_s10  ;;  %s15_s7 = int_to_ptr.vmem [resolvable:$true] %s14_s7 }
   0x3   :  { %p56_p1 = scmp.lt.u32.totalorder %s52_s10, %s137_s0 }
   0x5   :  { %p58_p2 = pnand %p56_p1, %p53_p0 }
   0x7   :  { %61 = shalt.err (!%p58_p2)
}
   0x8   :  { %s62_s15 = scalar_lea.vmem %s15_s7, 256  ;;  %p67_p4 = scmp.lt.s32.totalorder %s15_s7, %s15_s7 }
   0x9   :  { %p63_p3 = scmp.ne.s32.totalorder %s15_s7, %s62_s15  ;;  %p68_p5 = scmp.lt.s32.totalorder %s62_s15, %s62_s15 }
   0xb   :  { %p69_p6 = por %p68_p5, %p67_p4 }
   0xd   :  { %p70_p7 = pnand %p69_p6, %p63_p3 }
   0xf   :  { %73 = shalt.err (!%p70_p7)
}
  0x10   :  { %17 = dma.hbm_to_vmem [thread:$0]  %s137_s0, 256, %s15_s7, [#allocation3]  }
  0x11   :  { %96 = dma.done.wait [#allocation3], 256  }
  0x12   :  { %97 = vsyncadd [#allocation3], 4294967040  ;;  %v21_v0 = vld [vmem:[#allocation2] sm:$0xff]  ;;  %s101_s18 = smov 1   ;;  %v22_v1 = vld [vmem:[#allocation2 + $0x8] sm:$0xff]  ;;  %v27_v2 = vlaneseq  ;;  %s102_s19 = smov [#allocation5]  }
  0x13   :  { %23 = vrot.lane.b32.xlu0 %v21_v0, %s101_s18  ;;  %s40_s20 = sshll.u32 %s102_s19, 4  ;;  %s41_s20 = int_to_ptr.vmem [resolvable:$true] %s40_s20 }
  0x14   :  { %v28_v3 = vand.u32 127, %v27_v2  ;;  %s74_s0 = scalar_lea.vmem %s41_s20, 256  ;;  %p79_p9 = scmp.lt.s32.totalorder %s41_s20, %s41_s20 }
  0x15   :  { %p75_p8 = scmp.ne.s32.totalorder %s41_s20, %s74_s0  ;;  %p80_p10 = scmp.lt.s32.totalorder %s74_s0, %s74_s0 }
  0x16   :  { %vm29_vm0 = vcmp.lt.s32.totalorder %v28_v3, 1 }
  0x17   :  { %25 = vrot.lane.b32.xlu0 %v22_v1, %s101_s18  ;;  %p81_p11 = por %p80_p10, %p79_p9 }
  0x19   :  { %p82_p12 = pnand %p81_p11, %p75_p8 }
  0x85   :  { %v24_v4 = vpop.permute.xlu0 %23 }
  0x89   :  { %v26_v5 = vpop.permute.xlu0 %25 }
  0x8a   :  { %v30_v6 = vsel %vm29_vm0, %v24_v4, %v26_v5  ;;  %v31_v7 = vsel %vm29_vm0, %v26_v5, %v24_v4 }
  0x8b   :  { %32 = vst [vmem:[#allocation5] sm:$0xff] %v31_v7  ;;  %33 = vst [vmem:[#allocation5 + $0x8] sm:$0xff] %v30_v6 }
  0x8c   :  { %85 = shalt.err (!%p82_p12)
}
  0x8d   :  { %s86_s23 = scalar_lea.hbm %s138_s1, 256 }
  0x8e   :  { %p87_p13 = scmp.ne.s32.totalorder %s138_s1, %s86_s23  ;;  %p90_p0 = scmp.lt.u32.totalorder %s86_s23, %s138_s1 }
  0x90   :  { %p92_p1 = pnand %p90_p0, %p87_p13 }
  0x92   :  { %95 = shalt.err (!%p92_p1)
}
  0x93   :  { %43 = dma.vmem_to_hbm [thread:$0]  %s41_s20, 256, %s138_s1, [#allocation4]  }
  0x94   :  { %98 = dma.done.wait [#allocation4], 256  }
  0x95   :  { %99 = vsyncadd [#allocation4], 4294967040 }
  0x96   :  { %47 = vsyncpa [#allocation3], 1 }
  0x97   :  { %48 = vsyncpa [#allocation4], 1 }

</bundles_post_ra>
